<compile_context>
chip_gen: v7x
topology: tpu7x:2x2x1
jax: 0.10.0
libtpu: 0.0.40
codegen_flags: <defaults>
</compile_context>

<pallas_src>
import jax
import jax.numpy as jnp
from jax.experimental import pallas as pl
from jax.experimental.pallas import tpu as pltpu


def _tree_sum(terms):
    """Balanced-tree sum of a list of arrays (shorter dependence chain than a serial fold)."""
    while len(terms) > 1:
        nxt = [terms[i] + terms[i + 1] for i in range(0, len(terms) - 1, 2)]
        if len(terms) % 2:
            nxt.append(terms[-1])
        terms = nxt
    return terms[0]


def lstm_fc_kernel(x_ref, p_ref, out_ref):
    # x_ref: (B, S)  f32, lane-dense (input_size==1 axis dropped)
    # p_ref: (8, 4H) f32 packed parameter slab, gate order (i, f, o, g), g-columns pre-scaled by 2:
    #          row 0        : w_ih            (1, 4H)
    #          rows 1..H    : w_hh            (H, 4H)
    #          row H+1      : b_ih + b_hh     (1, 4H)
    #          row H+2      : [w_fc (H lanes) | b_fc (1 lane) | zero pad]
    #          remaining rows: zero padding to a full sublane tile
    B, S = x_ref.shape
    G = p_ref.shape[1]
    H = G // 4

    p = p_ref[...]                                     # single (8, 4H) load
    w_ih_row = p[0:1, :]                               # (1, 4H)
    w_hh = p[1:1 + H, :]                               # (H, 4H)
    b_row = p[1 + H:2 + H, :]                          # (1, 4H)  fused bias
    w_fc_row = p[2 + H:3 + H, 0:H]                     # (1, H)
    b_fc = p[2 + H:3 + H, H:H + 1]                     # (1, 1)

    x_all = x_ref[...].astype(jnp.float32)             # (B, S) one lane-dense load
    b_full = jnp.broadcast_to(b_row, (B, G))           # hoisted: single broadcast

    # h-independent gate contributions for every timestep: off the serial chain.
    gx = [x_all[:, t:t + 1] * w_ih_row + b_full for t in range(S)]   # each (B, 4H)

    # Hoist recurrent-weight row broadcasts out of the loop (JAX does not CSE broadcasts).
    w_hh_rows = [jnp.broadcast_to(w_hh[k:k + 1, :], (B, G)) for k in range(H)]

    h = jnp.zeros((B, H), jnp.float32)
    c = jnp.zeros((B, H), jnp.float32)

    # S is tiny and static -> fully unrolled recurrence; only the h-dependent term is serial.
    for t in range(S):
        # Recurrent term on the VPU: H independent broadcast-products (all read the same previous h),
        # combined with a balanced tree so only ~log2(H+1) adds sit on the critical path.
        prods = [h[:, k:k + 1] * w_hh_rows[k] for k in range(H)]     # (B,1) * (B,4H)
        gates = _tree_sum(prods + [gx[t]])                           # (B, 4H)

        # Single EUP push per step: sigmoid over all 4H lanes; g-gate columns were pre-scaled by 2
        # at pack time, so tanh(z_g) = 2*sigmoid(2*z_g) - 1 = 2*sig - 1.
        sig = jax.nn.sigmoid(gates)                                  # (B, 4H)
        i_g = sig[:, 0:H]
        f_g = sig[:, H:2 * H]
        o_g = sig[:, 2 * H:3 * H]
        g_g = 2.0 * sig[:, 3 * H:4 * H] - 1.0

        c = f_g * c + i_g * g_g
        h = o_g * jnp.tanh(c)

    # Final Linear on the VPU: broadcast multiply + lane reduce (no MXU for (B,4)@(4,1)).
    y = jnp.sum(h * w_fc_row, axis=-1, keepdims=True) + b_fc
    out_ref[...] = y.astype(out_ref.dtype)


def pack_lstm_params(w_ih, w_hh, b_ih, b_hh, w_fc, b_fc):
    """One-time parameter packing (call once, keep the result device-resident).

    - gate reorder (i, f, g, o) -> (i, f, o, g) so the kernel uses one contiguous sigmoid block,
    - fuse b_ih + b_hh,
    - pre-scale g-gate columns by 2 (enables tanh-via-sigmoid fusion in the kernel),
    - pack w_ih | w_hh | b | (w_fc, b_fc) into a single (8, 4H) f32 slab -> one input DMA.
    """
    H = w_hh.shape[1]
    G = 4 * H
    perm = jnp.concatenate([
        jnp.arange(0, 2 * H),          # i, f
        jnp.arange(3 * H, 4 * H),      # o
        jnp.arange(2 * H, 3 * H),      # g (last)
    ])
    gscale = jnp.concatenate([jnp.ones((3 * H,), jnp.float32),
                              jnp.full((H,), 2.0, jnp.float32)])     # x2 on g columns

    w_ih_t = jnp.transpose(w_ih)[:, perm] * gscale                   # (1, 4H)
    w_hh_t = jnp.transpose(w_hh)[:, perm] * gscale                   # (H, 4H)
    b = ((b_ih + b_hh)[perm] * gscale).reshape(1, G)                 # (1, 4H)
    fc_row = jnp.concatenate([w_fc.reshape(1, H),
                              b_fc.reshape(1, 1),
                              jnp.zeros((1, G - H - 1), jnp.float32)], axis=1)   # (1, 4H)
    pad_rows = 8 - (H + 3)
    params = jnp.concatenate(
        [w_ih_t, w_hh_t, b, fc_row, jnp.zeros((pad_rows, G), jnp.float32)], axis=0)
    return params.astype(jnp.float32)                                # (8, 4H)


@jax.jit
def lstm_forward(x, params):
    """x: (B, S, 1) float32 (batch_first); params from pack_lstm_params.
    Returns (B, 1) float32, matching LSTM.forward (fc applied to the last hidden state)."""
    B, S, I = x.shape
    assert I == 1, "module fixes input_size=1"
    x2 = x.reshape(B, S)                              # lane-dense, drop size-1 input axis (free)

    vmem = pl.BlockSpec(memory_space=pltpu.MemorySpace.VMEM)
    # Data is KiB-scale: no grid / no tiling (grid-step overhead would dominate at B=16).
    return pl.pallas_call(
        lstm_fc_kernel,
        out_shape=jax.ShapeDtypeStruct((B, 1), jnp.float32),
        in_specs=[vmem, vmem],
        out_specs=vmem,
    )(x2, params)


def lstm_forward_ref(x, w_ih, w_hh, b_ih, b_hh, w_fc, b_fc):
    """Pure-JAX reference replicating torch.nn.LSTM semantics (gate order i, f, g, o)."""
    B, S, I = x.shape
    H = w_hh.shape[1]
    h = jnp.zeros((B, H), jnp.float32)
    c = jnp.zeros((B, H), jnp.float32)
    for t in range(S):
        gates = x[:, t, :] @ w_ih.T + h @ w_hh.T + b_ih + b_hh
        i_g = jax.nn.sigmoid(gates[:, 0:H])
        f_g = jax.nn.sigmoid(gates[:, H:2 * H])
        g_g = jnp.tanh(gates[:, 2 * H:3 * H])
        o_g = jax.nn.sigmoid(gates[:, 3 * H:4 * H])
        c = f_g * c + i_g * g_g
        h = o_g * jnp.tanh(c)
    return h @ w_fc.T + b_fc


if __name__ == "__main__":
    # module defaults: input_size=1, hidden_size=4, num_layers=1, sequence_length=7, batch_size=16
    B, S, I, H = 16, 7, 1, 4

    key = jax.random.PRNGKey(0)
    k_x, k1, k2, k3, k4, k5, k6 = jax.random.split(key, 7)
    bound = 1.0 / jnp.sqrt(H)  # torch-style uniform init range

    x = jax.random.normal(k_x, (B, S, I), dtype=jnp.float32)
    w_ih = jax.random.uniform(k1, (4 * H, I), jnp.float32, -bound, bound)   # lstm.weight_ih_l0
    w_hh = jax.random.uniform(k2, (4 * H, H), jnp.float32, -bound, bound)   # lstm.weight_hh_l0
    b_ih = jax.random.uniform(k3, (4 * H,), jnp.float32, -bound, bound)     # lstm.bias_ih_l0
    b_hh = jax.random.uniform(k4, (4 * H,), jnp.float32, -bound, bound)     # lstm.bias_hh_l0
    w_fc = jax.random.uniform(k5, (1, H), jnp.float32, -bound, bound)       # fc.weight
    b_fc = jax.random.uniform(k6, (1,), jnp.float32, -bound, bound)         # fc.bias

    # One-time packing (weights are constant across calls); keep device-resident.
    params = jax.block_until_ready(pack_lstm_params(w_ih, w_hh, b_ih, b_hh, w_fc, b_fc))
    assert params.shape == (8, 4 * H)

    out = lstm_forward(x, params)
    out = jax.block_until_ready(out)

    ref = lstm_forward_ref(x, w_ih, w_hh, b_ih, b_hh, w_fc, b_fc)
    assert out.shape == (B, 1)
    assert jnp.allclose(out, ref, atol=1e-4, rtol=1e-4)

    print("KERNEL_OK")
</pallas_src>

<mosaic_0001>
module attributes {stable_mosaic.version = 11 : i64} {
  func.func @lstm_fc_kernel(%arg0: memref<16x7xf32, #tpu.memory_space<vmem>>, %arg1: memref<8x16xf32, #tpu.memory_space<vmem>>, %arg2: memref<16x1xf32, #tpu.memory_space<vmem>>) attributes {dimension_semantics = [], scalar_prefetch = 0 : i64, scratch_operands = 0 : i64, tpu.core_type = #tpu.core_type<tc>} {
    %c0 = arith.constant 0 : index
    %c0_0 = arith.constant 0 : index
    %0 = vector.load %arg1[%c0, %c0_0] : memref<8x16xf32, #tpu.memory_space<vmem>>, vector<8x16xf32>
    %1 = vector.extract_strided_slice %0 {offsets = [0, 0], sizes = [1, 16], strides = [1, 1]} : vector<8x16xf32> to vector<1x16xf32>
    %2 = vector.extract_strided_slice %0 {offsets = [1, 0], sizes = [4, 16], strides = [1, 1]} : vector<8x16xf32> to vector<4x16xf32>
    %3 = vector.extract_strided_slice %0 {offsets = [5, 0], sizes = [1, 16], strides = [1, 1]} : vector<8x16xf32> to vector<1x16xf32>
    %4 = vector.extract_strided_slice %0 {offsets = [6, 0], sizes = [1, 4], strides = [1, 1]} : vector<8x16xf32> to vector<1x4xf32>
    %5 = vector.extract_strided_slice %0 {offsets = [6, 4], sizes = [1, 1], strides = [1, 1]} : vector<8x16xf32> to vector<1x1xf32>
    %c0_1 = arith.constant 0 : index
    %c0_2 = arith.constant 0 : index
    %6 = vector.load %arg0[%c0_1, %c0_2] : memref<16x7xf32, #tpu.memory_space<vmem>>, vector<16x7xf32>
    %7 = vector.shape_cast %3 : vector<1x16xf32> to vector<1x16xf32>
    %8 = vector.broadcast %7 : vector<1x16xf32> to vector<16x16xf32>
    %9 = vector.extract_strided_slice %6 {offsets = [0, 0], sizes = [16, 1], strides = [1, 1]} : vector<16x7xf32> to vector<16x1xf32>
    %10 = vector.broadcast %9 : vector<16x1xf32> to vector<16x16xf32>
    %11 = vector.broadcast %1 : vector<1x16xf32> to vector<16x16xf32>
    %12 = arith.mulf %10, %11 : vector<16x16xf32>
    %13 = arith.addf %12, %8 : vector<16x16xf32>
    %14 = vector.extract_strided_slice %6 {offsets = [0, 1], sizes = [16, 1], strides = [1, 1]} : vector<16x7xf32> to vector<16x1xf32>
    %15 = vector.broadcast %14 : vector<16x1xf32> to vector<16x16xf32>
    %16 = vector.broadcast %1 : vector<1x16xf32> to vector<16x16xf32>
    %17 = arith.mulf %15, %16 : vector<16x16xf32>
    %18 = arith.addf %17, %8 : vector<16x16xf32>
    %19 = vector.extract_strided_slice %6 {offsets = [0, 2], sizes = [16, 1], strides = [1, 1]} : vector<16x7xf32> to vector<16x1xf32>
    %20 = vector.broadcast %19 : vector<16x1xf32> to vector<16x16xf32>
    %21 = vector.broadcast %1 : vector<1x16xf32> to vector<16x16xf32>
    %22 = arith.mulf %20, %21 : vector<16x16xf32>
    %23 = arith.addf %22, %8 : vector<16x16xf32>
    %24 = vector.extract_strided_slice %6 {offsets = [0, 3], sizes = [16, 1], strides = [1, 1]} : vector<16x7xf32> to vector<16x1xf32>
    %25 = vector.broadcast %24 : vector<16x1xf32> to vector<16x16xf32>
    %26 = vector.broadcast %1 : vector<1x16xf32> to vector<16x16xf32>
    %27 = arith.mulf %25, %26 : vector<16x16xf32>
    %28 = arith.addf %27, %8 : vector<16x16xf32>
    %29 = vector.extract_strided_slice %6 {offsets = [0, 4], sizes = [16, 1], strides = [1, 1]} : vector<16x7xf32> to vector<16x1xf32>
    %30 = vector.broadcast %29 : vector<16x1xf32> to vector<16x16xf32>
    %31 = vector.broadcast %1 : vector<1x16xf32> to vector<16x16xf32>
    %32 = arith.mulf %30, %31 : vector<16x16xf32>
    %33 = arith.addf %32, %8 : vector<16x16xf32>
    %34 = vector.extract_strided_slice %6 {offsets = [0, 5], sizes = [16, 1], strides = [1, 1]} : vector<16x7xf32> to vector<16x1xf32>
    %35 = vector.broadcast %34 : vector<16x1xf32> to vector<16x16xf32>
    %36 = vector.broadcast %1 : vector<1x16xf32> to vector<16x16xf32>
    %37 = arith.mulf %35, %36 : vector<16x16xf32>
    %38 = arith.addf %37, %8 : vector<16x16xf32>
    %39 = vector.extract_strided_slice %6 {offsets = [0, 6], sizes = [16, 1], strides = [1, 1]} : vector<16x7xf32> to vector<16x1xf32>
    %40 = vector.broadcast %39 : vector<16x1xf32> to vector<16x16xf32>
    %41 = vector.broadcast %1 : vector<1x16xf32> to vector<16x16xf32>
    %42 = arith.mulf %40, %41 : vector<16x16xf32>
    %43 = arith.addf %42, %8 : vector<16x16xf32>
    %44 = vector.extract_strided_slice %2 {offsets = [0, 0], sizes = [1, 16], strides = [1, 1]} : vector<4x16xf32> to vector<1x16xf32>
    %45 = vector.shape_cast %44 : vector<1x16xf32> to vector<1x16xf32>
    %46 = vector.broadcast %45 : vector<1x16xf32> to vector<16x16xf32>
    %47 = vector.extract_strided_slice %2 {offsets = [1, 0], sizes = [1, 16], strides = [1, 1]} : vector<4x16xf32> to vector<1x16xf32>
    %48 = vector.shape_cast %47 : vector<1x16xf32> to vector<1x16xf32>
    %49 = vector.broadcast %48 : vector<1x16xf32> to vector<16x16xf32>
    %50 = vector.extract_strided_slice %2 {offsets = [2, 0], sizes = [1, 16], strides = [1, 1]} : vector<4x16xf32> to vector<1x16xf32>
    %51 = vector.shape_cast %50 : vector<1x16xf32> to vector<1x16xf32>
    %52 = vector.broadcast %51 : vector<1x16xf32> to vector<16x16xf32>
    %53 = vector.extract_strided_slice %2 {offsets = [3, 0], sizes = [1, 16], strides = [1, 1]} : vector<4x16xf32> to vector<1x16xf32>
    %54 = vector.shape_cast %53 : vector<1x16xf32> to vector<1x16xf32>
    %55 = vector.broadcast %54 : vector<1x16xf32> to vector<16x16xf32>
    %cst = arith.constant 0.000000e+00 : f32
    %56 = vector.broadcast %cst : f32 to vector<16x4xf32>
    %cst_3 = arith.constant 0.000000e+00 : f32
    %57 = vector.broadcast %cst_3 : f32 to vector<16x4xf32>
    %58 = vector.extract_strided_slice %56 {offsets = [0, 0], sizes = [16, 1], strides = [1, 1]} : vector<16x4xf32> to vector<16x1xf32>
    %59 = vector.broadcast %58 : vector<16x1xf32> to vector<16x16xf32>
    %60 = arith.mulf %59, %46 : vector<16x16xf32>
    %61 = vector.extract_strided_slice %56 {offsets = [0, 1], sizes = [16, 1], strides = [1, 1]} : vector<16x4xf32> to vector<16x1xf32>
    %62 = vector.broadcast %61 : vector<16x1xf32> to vector<16x16xf32>
    %63 = arith.mulf %62, %49 : vector<16x16xf32>
    %64 = vector.extract_strided_slice %56 {offsets = [0, 2], sizes = [16, 1], strides = [1, 1]} : vector<16x4xf32> to vector<16x1xf32>
    %65 = vector.broadcast %64 : vector<16x1xf32> to vector<16x16xf32>
    %66 = arith.mulf %65, %52 : vector<16x16xf32>
    %67 = vector.extract_strided_slice %56 {offsets = [0, 3], sizes = [16, 1], strides = [1, 1]} : vector<16x4xf32> to vector<16x1xf32>
    %68 = vector.broadcast %67 : vector<16x1xf32> to vector<16x16xf32>
    %69 = arith.mulf %68, %55 : vector<16x16xf32>
    %70 = arith.addf %60, %63 : vector<16x16xf32>
    %71 = arith.addf %66, %69 : vector<16x16xf32>
    %72 = arith.addf %70, %71 : vector<16x16xf32>
    %73 = arith.addf %72, %13 : vector<16x16xf32>
    %74 = arith.negf %73 : vector<16x16xf32>
    %75 = math.exp %74 : vector<16x16xf32>
    %cst_4 = arith.constant 1.000000e+00 : f32
    %76 = vector.broadcast %cst_4 : f32 to vector<16x16xf32>
    %77 = arith.addf %76, %75 : vector<16x16xf32>
    %78 = arith.divf %76, %77 : vector<16x16xf32>
    %79 = vector.extract_strided_slice %78 {offsets = [0, 0], sizes = [16, 4], strides = [1, 1]} : vector<16x16xf32> to vector<16x4xf32>
    %80 = vector.extract_strided_slice %78 {offsets = [0, 4], sizes = [16, 4], strides = [1, 1]} : vector<16x16xf32> to vector<16x4xf32>
    %81 = vector.extract_strided_slice %78 {offsets = [0, 8], sizes = [16, 4], strides = [1, 1]} : vector<16x16xf32> to vector<16x4xf32>
    %82 = vector.extract_strided_slice %78 {offsets = [0, 12], sizes = [16, 4], strides = [1, 1]} : vector<16x16xf32> to vector<16x4xf32>
    %cst_5 = arith.constant 2.000000e+00 : f32
    %83 = vector.broadcast %cst_5 : f32 to vector<16x4xf32>
    %84 = arith.mulf %83, %82 : vector<16x4xf32>
    %cst_6 = arith.constant 1.000000e+00 : f32
    %85 = vector.broadcast %cst_6 : f32 to vector<16x4xf32>
    %86 = arith.subf %84, %85 : vector<16x4xf32>
    %87 = arith.mulf %80, %57 : vector<16x4xf32>
    %88 = arith.mulf %79, %86 : vector<16x4xf32>
    %89 = arith.addf %87, %88 : vector<16x4xf32>
    %90 = math.tanh %89 : vector<16x4xf32>
    %91 = arith.mulf %81, %90 : vector<16x4xf32>
    %92 = vector.extract_strided_slice %91 {offsets = [0, 0], sizes = [16, 1], strides = [1, 1]} : vector<16x4xf32> to vector<16x1xf32>
    %93 = vector.broadcast %92 : vector<16x1xf32> to vector<16x16xf32>
    %94 = arith.mulf %93, %46 : vector<16x16xf32>
    %95 = vector.extract_strided_slice %91 {offsets = [0, 1], sizes = [16, 1], strides = [1, 1]} : vector<16x4xf32> to vector<16x1xf32>
    %96 = vector.broadcast %95 : vector<16x1xf32> to vector<16x16xf32>
    %97 = arith.mulf %96, %49 : vector<16x16xf32>
    %98 = vector.extract_strided_slice %91 {offsets = [0, 2], sizes = [16, 1], strides = [1, 1]} : vector<16x4xf32> to vector<16x1xf32>
    %99 = vector.broadcast %98 : vector<16x1xf32> to vector<16x16xf32>
    %100 = arith.mulf %99, %52 : vector<16x16xf32>
    %101 = vector.extract_strided_slice %91 {offsets = [0, 3], sizes = [16, 1], strides = [1, 1]} : vector<16x4xf32> to vector<16x1xf32>
    %102 = vector.broadcast %101 : vector<16x1xf32> to vector<16x16xf32>
    %103 = arith.mulf %102, %55 : vector<16x16xf32>
    %104 = arith.addf %94, %97 : vector<16x16xf32>
    %105 = arith.addf %100, %103 : vector<16x16xf32>
    %106 = arith.addf %104, %105 : vector<16x16xf32>
    %107 = arith.addf %106, %18 : vector<16x16xf32>
    %108 = arith.negf %107 : vector<16x16xf32>
    %109 = math.exp %108 : vector<16x16xf32>
    %cst_7 = arith.constant 1.000000e+00 : f32
    %110 = vector.broadcast %cst_7 : f32 to vector<16x16xf32>
    %111 = arith.addf %110, %109 : vector<16x16xf32>
    %112 = arith.divf %110, %111 : vector<16x16xf32>
    %113 = vector.extract_strided_slice %112 {offsets = [0, 0], sizes = [16, 4], strides = [1, 1]} : vector<16x16xf32> to vector<16x4xf32>
    %114 = vector.extract_strided_slice %112 {offsets = [0, 4], sizes = [16, 4], strides = [1, 1]} : vector<16x16xf32> to vector<16x4xf32>
    %115 = vector.extract_strided_slice %112 {offsets = [0, 8], sizes = [16, 4], strides = [1, 1]} : vector<16x16xf32> to vector<16x4xf32>
    %116 = vector.extract_strided_slice %112 {offsets = [0, 12], sizes = [16, 4], strides = [1, 1]} : vector<16x16xf32> to vector<16x4xf32>
    %cst_8 = arith.constant 2.000000e+00 : f32
    %117 = vector.broadcast %cst_8 : f32 to vector<16x4xf32>
    %118 = arith.mulf %117, %116 : vector<16x4xf32>
    %cst_9 = arith.constant 1.000000e+00 : f32
    %119 = vector.broadcast %cst_9 : f32 to vector<16x4xf32>
    %120 = arith.subf %118, %119 : vector<16x4xf32>
    %121 = arith.mulf %114, %89 : vector<16x4xf32>
    %122 = arith.mulf %113, %120 : vector<16x4xf32>
    %123 = arith.addf %121, %122 : vector<16x4xf32>
    %124 = math.tanh %123 : vector<16x4xf32>
    %125 = arith.mulf %115, %124 : vector<16x4xf32>
    %126 = vector.extract_strided_slice %125 {offsets = [0, 0], sizes = [16, 1], strides = [1, 1]} : vector<16x4xf32> to vector<16x1xf32>
    %127 = vector.broadcast %126 : vector<16x1xf32> to vector<16x16xf32>
    %128 = arith.mulf %127, %46 : vector<16x16xf32>
    %129 = vector.extract_strided_slice %125 {offsets = [0, 1], sizes = [16, 1], strides = [1, 1]} : vector<16x4xf32> to vector<16x1xf32>
    %130 = vector.broadcast %129 : vector<16x1xf32> to vector<16x16xf32>
    %131 = arith.mulf %130, %49 : vector<16x16xf32>
    %132 = vector.extract_strided_slice %125 {offsets = [0, 2], sizes = [16, 1], strides = [1, 1]} : vector<16x4xf32> to vector<16x1xf32>
    %133 = vector.broadcast %132 : vector<16x1xf32> to vector<16x16xf32>
    %134 = arith.mulf %133, %52 : vector<16x16xf32>
    %135 = vector.extract_strided_slice %125 {offsets = [0, 3], sizes = [16, 1], strides = [1, 1]} : vector<16x4xf32> to vector<16x1xf32>
    %136 = vector.broadcast %135 : vector<16x1xf32> to vector<16x16xf32>
    %137 = arith.mulf %136, %55 : vector<16x16xf32>
    %138 = arith.addf %128, %131 : vector<16x16xf32>
    %139 = arith.addf %134, %137 : vector<16x16xf32>
    %140 = arith.addf %138, %139 : vector<16x16xf32>
    %141 = arith.addf %140, %23 : vector<16x16xf32>
    %142 = arith.negf %141 : vector<16x16xf32>
    %143 = math.exp %142 : vector<16x16xf32>
    %cst_10 = arith.constant 1.000000e+00 : f32
    %144 = vector.broadcast %cst_10 : f32 to vector<16x16xf32>
    %145 = arith.addf %144, %143 : vector<16x16xf32>
    %146 = arith.divf %144, %145 : vector<16x16xf32>
    %147 = vector.extract_strided_slice %146 {offsets = [0, 0], sizes = [16, 4], strides = [1, 1]} : vector<16x16xf32> to vector<16x4xf32>
    %148 = vector.extract_strided_slice %146 {offsets = [0, 4], sizes = [16, 4], strides = [1, 1]} : vector<16x16xf32> to vector<16x4xf32>
    %149 = vector.extract_strided_slice %146 {offsets = [0, 8], sizes = [16, 4], strides = [1, 1]} : vector<16x16xf32> to vector<16x4xf32>
    %150 = vector.extract_strided_slice %146 {offsets = [0, 12], sizes = [16, 4], strides = [1, 1]} : vector<16x16xf32> to vector<16x4xf32>
    %cst_11 = arith.constant 2.000000e+00 : f32
    %151 = vector.broadcast %cst_11 : f32 to vector<16x4xf32>
    %152 = arith.mulf %151, %150 : vector<16x4xf32>
    %cst_12 = arith.constant 1.000000e+00 : f32
    %153 = vector.broadcast %cst_12 : f32 to vector<16x4xf32>
    %154 = arith.subf %152, %153 : vector<16x4xf32>
    %155 = arith.mulf %148, %123 : vector<16x4xf32>
    %156 = arith.mulf %147, %154 : vector<16x4xf32>
    %157 = arith.addf %155, %156 : vector<16x4xf32>
    %158 = math.tanh %157 : vector<16x4xf32>
    %159 = arith.mulf %149, %158 : vector<16x4xf32>
    %160 = vector.extract_strided_slice %159 {offsets = [0, 0], sizes = [16, 1], strides = [1, 1]} : vector<16x4xf32> to vector<16x1xf32>
    %161 = vector.broadcast %160 : vector<16x1xf32> to vector<16x16xf32>
    %162 = arith.mulf %161, %46 : vector<16x16xf32>
    %163 = vector.extract_strided_slice %159 {offsets = [0, 1], sizes = [16, 1], strides = [1, 1]} : vector<16x4xf32> to vector<16x1xf32>
    %164 = vector.broadcast %163 : vector<16x1xf32> to vector<16x16xf32>
    %165 = arith.mulf %164, %49 : vector<16x16xf32>
    %166 = vector.extract_strided_slice %159 {offsets = [0, 2], sizes = [16, 1], strides = [1, 1]} : vector<16x4xf32> to vector<16x1xf32>
    %167 = vector.broadcast %166 : vector<16x1xf32> to vector<16x16xf32>
    %168 = arith.mulf %167, %52 : vector<16x16xf32>
    %169 = vector.extract_strided_slice %159 {offsets = [0, 3], sizes = [16, 1], strides = [1, 1]} : vector<16x4xf32> to vector<16x1xf32>
    %170 = vector.broadcast %169 : vector<16x1xf32> to vector<16x16xf32>
    %171 = arith.mulf %170, %55 : vector<16x16xf32>
    %172 = arith.addf %162, %165 : vector<16x16xf32>
    %173 = arith.addf %168, %171 : vector<16x16xf32>
    %174 = arith.addf %172, %173 : vector<16x16xf32>
    %175 = arith.addf %174, %28 : vector<16x16xf32>
    %176 = arith.negf %175 : vector<16x16xf32>
    %177 = math.exp %176 : vector<16x16xf32>
    %cst_13 = arith.constant 1.000000e+00 : f32
    %178 = vector.broadcast %cst_13 : f32 to vector<16x16xf32>
    %179 = arith.addf %178, %177 : vector<16x16xf32>
    %180 = arith.divf %178, %179 : vector<16x16xf32>
    %181 = vector.extract_strided_slice %180 {offsets = [0, 0], sizes = [16, 4], strides = [1, 1]} : vector<16x16xf32> to vector<16x4xf32>
    %182 = vector.extract_strided_slice %180 {offsets = [0, 4], sizes = [16, 4], strides = [1, 1]} : vector<16x16xf32> to vector<16x4xf32>
    %183 = vector.extract_strided_slice %180 {offsets = [0, 8], sizes = [16, 4], strides = [1, 1]} : vector<16x16xf32> to vector<16x4xf32>
    %184 = vector.extract_strided_slice %180 {offsets = [0, 12], sizes = [16, 4], strides = [1, 1]} : vector<16x16xf32> to vector<16x4xf32>
    %cst_14 = arith.constant 2.000000e+00 : f32
    %185 = vector.broadcast %cst_14 : f32 to vector<16x4xf32>
    %186 = arith.mulf %185, %184 : vector<16x4xf32>
    %cst_15 = arith.constant 1.000000e+00 : f32
    %187 = vector.broadcast %cst_15 : f32 to vector<16x4xf32>
    %188 = arith.subf %186, %187 : vector<16x4xf32>
    %189 = arith.mulf %182, %157 : vector<16x4xf32>
    %190 = arith.mulf %181, %188 : vector<16x4xf32>
    %191 = arith.addf %189, %190 : vector<16x4xf32>
    %192 = math.tanh %191 : vector<16x4xf32>
    %193 = arith.mulf %183, %192 : vector<16x4xf32>
    %194 = vector.extract_strided_slice %193 {offsets = [0, 0], sizes = [16, 1], strides = [1, 1]} : vector<16x4xf32> to vector<16x1xf32>
    %195 = vector.broadcast %194 : vector<16x1xf32> to vector<16x16xf32>
    %196 = arith.mulf %195, %46 : vector<16x16xf32>
    %197 = vector.extract_strided_slice %193 {offsets = [0, 1], sizes = [16, 1], strides = [1, 1]} : vector<16x4xf32> to vector<16x1xf32>
    %198 = vector.broadcast %197 : vector<16x1xf32> to vector<16x16xf32>
    %199 = arith.mulf %198, %49 : vector<16x16xf32>
    %200 = vector.extract_strided_slice %193 {offsets = [0, 2], sizes = [16, 1], strides = [1, 1]} : vector<16x4xf32> to vector<16x1xf32>
    %201 = vector.broadcast %200 : vector<16x1xf32> to vector<16x16xf32>
    %202 = arith.mulf %201, %52 : vector<16x16xf32>
    %203 = vector.extract_strided_slice %193 {offsets = [0, 3], sizes = [16, 1], strides = [1, 1]} : vector<16x4xf32> to vector<16x1xf32>
    %204 = vector.broadcast %203 : vector<16x1xf32> to vector<16x16xf32>
    %205 = arith.mulf %204, %55 : vector<16x16xf32>
    %206 = arith.addf %196, %199 : vector<16x16xf32>
    %207 = arith.addf %202, %205 : vector<16x16xf32>
    %208 = arith.addf %206, %207 : vector<16x16xf32>
    %209 = arith.addf %208, %33 : vector<16x16xf32>
    %210 = arith.negf %209 : vector<16x16xf32>
    %211 = math.exp %210 : vector<16x16xf32>
    %cst_16 = arith.constant 1.000000e+00 : f32
    %212 = vector.broadcast %cst_16 : f32 to vector<16x16xf32>
    %213 = arith.addf %212, %211 : vector<16x16xf32>
    %214 = arith.divf %212, %213 : vector<16x16xf32>
    %215 = vector.extract_strided_slice %214 {offsets = [0, 0], sizes = [16, 4], strides = [1, 1]} : vector<16x16xf32> to vector<16x4xf32>
    %216 = vector.extract_strided_slice %214 {offsets = [0, 4], sizes = [16, 4], strides = [1, 1]} : vector<16x16xf32> to vector<16x4xf32>
    %217 = vector.extract_strided_slice %214 {offsets = [0, 8], sizes = [16, 4], strides = [1, 1]} : vector<16x16xf32> to vector<16x4xf32>
    %218 = vector.extract_strided_slice %214 {offsets = [0, 12], sizes = [16, 4], strides = [1, 1]} : vector<16x16xf32> to vector<16x4xf32>
    %cst_17 = arith.constant 2.000000e+00 : f32
    %219 = vector.broadcast %cst_17 : f32 to vector<16x4xf32>
    %220 = arith.mulf %219, %218 : vector<16x4xf32>
    %cst_18 = arith.constant 1.000000e+00 : f32
    %221 = vector.broadcast %cst_18 : f32 to vector<16x4xf32>
    %222 = arith.subf %220, %221 : vector<16x4xf32>
    %223 = arith.mulf %216, %191 : vector<16x4xf32>
    %224 = arith.mulf %215, %222 : vector<16x4xf32>
    %225 = arith.addf %223, %224 : vector<16x4xf32>
    %226 = math.tanh %225 : vector<16x4xf32>
    %227 = arith.mulf %217, %226 : vector<16x4xf32>
    %228 = vector.extract_strided_slice %227 {offsets = [0, 0], sizes = [16, 1], strides = [1, 1]} : vector<16x4xf32> to vector<16x1xf32>
    %229 = vector.broadcast %228 : vector<16x1xf32> to vector<16x16xf32>
    %230 = arith.mulf %229, %46 : vector<16x16xf32>
    %231 = vector.extract_strided_slice %227 {offsets = [0, 1], sizes = [16, 1], strides = [1, 1]} : vector<16x4xf32> to vector<16x1xf32>
    %232 = vector.broadcast %231 : vector<16x1xf32> to vector<16x16xf32>
    %233 = arith.mulf %232, %49 : vector<16x16xf32>
    %234 = vector.extract_strided_slice %227 {offsets = [0, 2], sizes = [16, 1], strides = [1, 1]} : vector<16x4xf32> to vector<16x1xf32>
    %235 = vector.broadcast %234 : vector<16x1xf32> to vector<16x16xf32>
    %236 = arith.mulf %235, %52 : vector<16x16xf32>
    %237 = vector.extract_strided_slice %227 {offsets = [0, 3], sizes = [16, 1], strides = [1, 1]} : vector<16x4xf32> to vector<16x1xf32>
    %238 = vector.broadcast %237 : vector<16x1xf32> to vector<16x16xf32>
    %239 = arith.mulf %238, %55 : vector<16x16xf32>
    %240 = arith.addf %230, %233 : vector<16x16xf32>
    %241 = arith.addf %236, %239 : vector<16x16xf32>
    %242 = arith.addf %240, %241 : vector<16x16xf32>
    %243 = arith.addf %242, %38 : vector<16x16xf32>
    %244 = arith.negf %243 : vector<16x16xf32>
    %245 = math.exp %244 : vector<16x16xf32>
    %cst_19 = arith.constant 1.000000e+00 : f32
    %246 = vector.broadcast %cst_19 : f32 to vector<16x16xf32>
    %247 = arith.addf %246, %245 : vector<16x16xf32>
    %248 = arith.divf %246, %247 : vector<16x16xf32>
    %249 = vector.extract_strided_slice %248 {offsets = [0, 0], sizes = [16, 4], strides = [1, 1]} : vector<16x16xf32> to vector<16x4xf32>
    %250 = vector.extract_strided_slice %248 {offsets = [0, 4], sizes = [16, 4], strides = [1, 1]} : vector<16x16xf32> to vector<16x4xf32>
    %251 = vector.extract_strided_slice %248 {offsets = [0, 8], sizes = [16, 4], strides = [1, 1]} : vector<16x16xf32> to vector<16x4xf32>
    %252 = vector.extract_strided_slice %248 {offsets = [0, 12], sizes = [16, 4], strides = [1, 1]} : vector<16x16xf32> to vector<16x4xf32>
    %cst_20 = arith.constant 2.000000e+00 : f32
    %253 = vector.broadcast %cst_20 : f32 to vector<16x4xf32>
    %254 = arith.mulf %253, %252 : vector<16x4xf32>
    %cst_21 = arith.constant 1.000000e+00 : f32
    %255 = vector.broadcast %cst_21 : f32 to vector<16x4xf32>
    %256 = arith.subf %254, %255 : vector<16x4xf32>
    %257 = arith.mulf %250, %225 : vector<16x4xf32>
    %258 = arith.mulf %249, %256 : vector<16x4xf32>
    %259 = arith.addf %257, %258 : vector<16x4xf32>
    %260 = math.tanh %259 : vector<16x4xf32>
    %261 = arith.mulf %251, %260 : vector<16x4xf32>
    %262 = vector.extract_strided_slice %261 {offsets = [0, 0], sizes = [16, 1], strides = [1, 1]} : vector<16x4xf32> to vector<16x1xf32>
    %263 = vector.broadcast %262 : vector<16x1xf32> to vector<16x16xf32>
    %264 = arith.mulf %263, %46 : vector<16x16xf32>
    %265 = vector.extract_strided_slice %261 {offsets = [0, 1], sizes = [16, 1], strides = [1, 1]} : vector<16x4xf32> to vector<16x1xf32>
    %266 = vector.broadcast %265 : vector<16x1xf32> to vector<16x16xf32>
    %267 = arith.mulf %266, %49 : vector<16x16xf32>
    %268 = vector.extract_strided_slice %261 {offsets = [0, 2], sizes = [16, 1], strides = [1, 1]} : vector<16x4xf32> to vector<16x1xf32>
    %269 = vector.broadcast %268 : vector<16x1xf32> to vector<16x16xf32>
    %270 = arith.mulf %269, %52 : vector<16x16xf32>
    %271 = vector.extract_strided_slice %261 {offsets = [0, 3], sizes = [16, 1], strides = [1, 1]} : vector<16x4xf32> to vector<16x1xf32>
    %272 = vector.broadcast %271 : vector<16x1xf32> to vector<16x16xf32>
    %273 = arith.mulf %272, %55 : vector<16x16xf32>
    %274 = arith.addf %264, %267 : vector<16x16xf32>
    %275 = arith.addf %270, %273 : vector<16x16xf32>
    %276 = arith.addf %274, %275 : vector<16x16xf32>
    %277 = arith.addf %276, %43 : vector<16x16xf32>
    %278 = arith.negf %277 : vector<16x16xf32>
    %279 = math.exp %278 : vector<16x16xf32>
    %cst_22 = arith.constant 1.000000e+00 : f32
    %280 = vector.broadcast %cst_22 : f32 to vector<16x16xf32>
    %281 = arith.addf %280, %279 : vector<16x16xf32>
    %282 = arith.divf %280, %281 : vector<16x16xf32>
    %283 = vector.extract_strided_slice %282 {offsets = [0, 0], sizes = [16, 4], strides = [1, 1]} : vector<16x16xf32> to vector<16x4xf32>
    %284 = vector.extract_strided_slice %282 {offsets = [0, 4], sizes = [16, 4], strides = [1, 1]} : vector<16x16xf32> to vector<16x4xf32>
    %285 = vector.extract_strided_slice %282 {offsets = [0, 8], sizes = [16, 4], strides = [1, 1]} : vector<16x16xf32> to vector<16x4xf32>
    %286 = vector.extract_strided_slice %282 {offsets = [0, 12], sizes = [16, 4], strides = [1, 1]} : vector<16x16xf32> to vector<16x4xf32>
    %cst_23 = arith.constant 2.000000e+00 : f32
    %287 = vector.broadcast %cst_23 : f32 to vector<16x4xf32>
    %288 = arith.mulf %287, %286 : vector<16x4xf32>
    %cst_24 = arith.constant 1.000000e+00 : f32
    %289 = vector.broadcast %cst_24 : f32 to vector<16x4xf32>
    %290 = arith.subf %288, %289 : vector<16x4xf32>
    %291 = arith.mulf %284, %259 : vector<16x4xf32>
    %292 = arith.mulf %283, %290 : vector<16x4xf32>
    %293 = arith.addf %291, %292 : vector<16x4xf32>
    %294 = math.tanh %293 : vector<16x4xf32>
    %295 = arith.mulf %285, %294 : vector<16x4xf32>
    %296 = vector.broadcast %4 : vector<1x4xf32> to vector<16x4xf32>
    %297 = arith.mulf %295, %296 : vector<16x4xf32>
    %cst_25 = arith.constant dense<0.000000e+00> : vector<16xf32>
    %298 = vector.multi_reduction <add>, %297, %cst_25 [1] : vector<16x4xf32> to vector<16xf32>
    %299 = vector.shape_cast %298 : vector<16xf32> to vector<16x1xf32>
    %300 = vector.broadcast %5 : vector<1x1xf32> to vector<16x1xf32>
    %301 = arith.addf %299, %300 : vector<16x1xf32>
    %c0_26 = arith.constant 0 : index
    %c0_27 = arith.constant 0 : index
    %302 = vector.load %arg2[%c0_26, %c0_27] : memref<16x1xf32, #tpu.memory_space<vmem>>, vector<16x1xf32>
    tpu.vector_store %arg2[%c0_26, %c0_27], %301 {strides = array<i32>} : memref<16x1xf32, #tpu.memory_space<vmem>>, vector<16x1xf32>,
    return
  }
}

</mosaic_0001>

<bundles_post_ra>
// kernel: lstm_forward.1
= control target key start
LH: loop header
LB: loop body
LE: loop exit
PB: predicated region body
PF: predicated region fallthrough
CT: control target
= control target key end

     0   :  { %v1012_v0 = vmov 0   ;;  %v14_v3 = vlaneseq  ;;  %s1013_s15 = smov 116   ;;  %s1014_s16 = smov 4   ;;  %v1015_v52 = vmov 8   ;;  %v1016_v62 = vmov 9   ;;  %s1317_s0 = inlined_call_operand.vmem [shape: f32[16,7], index: 0, kind: input, shape index: {}]   ;;  %s1318_s1 = inlined_call_operand.vmem [shape: f32[8,16], index: 1, kind: input, shape index: {}]   ;;  %s1319_s2 = inlined_call_operand.vmem [shape: f32[16,1], index: 2, kind: output, shape index: {}]  }
   0x1   :  { %869 = vset.pattern.permute.xlu0 %v1012_v0  ;;  %v1046_v1 = vld [vmem:[%s1317_s0] sm:$0xff]  ;;  %v1052_v2 = vld [vmem:[%s1317_s0 + $0x8] sm:$0xff]  ;;  %871 = vset.pattern.permute.xlu1 %v1015_v52  ;;  %v1017_v63 = vmov 11   ;;  %v1018_v0 = vmov 10   ;;  %s1025_s22 = smov 8   ;;  %s1026_s23 = smov 120  }
   0x2   :  { %20 = vperm.xlu0 %869, %v1046_v1   ;;  %v1055_v4 = vshrl.u32 %v14_v3, 7  ;;  %v11_v9 = vld [vmem:[%s1318_s1] sm:$0xff]  ;;  %v1019_v3 = vmov 1   ;;  %vm801_vm0 = vcmask 31744   ;;  %vm818_vm1 = vcmask 7168  }
   0x4   :  { %v110_v5 = vsub.s32 1, %v1055_v4  ;;  %v114_v6 = vsub.s32 2, %v1055_v4  ;;  %v118_v7 = vsub.s32 3, %v1055_v4  ;;  %v122_v8 = vsub.s32 4, %v1055_v4 }
   0x5   :  { %v30_v14 = vsub.s32 0, %v1055_v4  ;;  %v16_v19 = vsub.s32 5, %v1055_v4 }
   0x6   :  { %25 = vperm.xlu0 %869, %v1052_v2   ;;  %v1064_v10 = vrot.slane %v11_v9, %v110_v5  ;;  %v1066_v11 = vrot.slane %v11_v9, %v114_v6  ;;  %v1068_v12 = vrot.slane %v11_v9, %v118_v7  ;;  %v1070_v13 = vrot.slane %v11_v9, %v122_v8 }
   0x7   :  { %v1078_v20 = vrot.slane %v11_v9, %v30_v14  ;;  %v1080_v23 = vrot.slane %v11_v9, %v16_v19 }
   0x8   :  { %v124_v15 = vmul.f32 0.0, %v1064_v10  ;;  %v125_v16 = vmul.f32 0.0, %v1066_v11  ;;  %v126_v17 = vmul.f32 0.0, %v1068_v12  ;;  %v127_v18 = vmul.f32 0.0, %v1070_v13 }
   0xa   :  { %v128_v21 = vadd.f32 %v125_v16, %v124_v15  ;;  %v129_v22 = vadd.f32 %v127_v18, %v126_v17  ;;  %870 = vset.pattern.permute.xlu0 %v1015_v52 }
   0xc   :  { %v130_v25 = vadd.f32 %v129_v22, %v128_v21 }
  0x81   :  { %v21_v24 = vpop.permute.xlu0 %20 }
  0x82   :  { %v32_v26 = vmul.f32 %v1078_v20, %v21_v24 }
  0x84   :  { %v34_v27 = vadd.f32 %v32_v26, %v1080_v23 }
  0x85   :  { %v26_v28 = vpop.permute.xlu0 %25 }
  0x86   :  { %v131_v29 = vadd.f32 %v130_v25, %v34_v27  ;;  %v33_v30 = vmul.f32 %v1078_v20, %v26_v28 }
  0x88   :  { %v825_v31 = vmul.f32 -1.442695, %v131_v29  ;;  %v35_v32 = vadd.f32 %v33_v30, %v1080_v23 }
  0x8a   :  { %925 = vpow2.f32 %v825_v31  ;;  %v132_v33 = vadd.f32 %v130_v25, %v35_v32 }
  0x8c   :  { %v826_v34 = vmul.f32 -1.442695, %v132_v33 }
  0x8e   :  { %927 = vpow2.f32 %v826_v34 }
  0x94   :  { %v926_v35 = vpop.eup %925 }
  0x95   :  { %v139_v36 = vadd.f32 1.0, %v926_v35 }
  0x97   :  { %929 = vrcp.f32 %v139_v36 }
  0x98   :  { %v928_v37 = vpop.eup %927 }
  0x99   :  { %v140_v38 = vadd.f32 1.0, %v928_v37 }
  0x9b   :  { %931 = vrcp.f32 %v140_v38 }
  0xa1   :  { %v930_v39 = vpop.eup %929 }
  0xa2   :  { %v145_v40 = vmul.f32 2.0, %v930_v39  ;;  %v149_v49 = vmul.f32 0.0, %v930_v39 }
  0xa4   :  { %v827_v41 = vadd.f32 -1.0, %v145_v40 }
  0xa5   :  { %v932_v42 = vpop.eup %931 }
  0xa6   :  { %153 = vrot.lane.b32.xlu1 %v827_v41, %s1013_s15  ;;  %v146_v43 = vmul.f32 2.0, %v932_v42  ;;  %v150_v53 = vmul.f32 0.0, %v932_v42 }
  0xa8   :  { %v828_v44 = vadd.f32 -1.0, %v146_v43 }
  0xaa   :  { %155 = vrot.lane.b32.xlu1 %v828_v44, %s1013_s15 }
 0x118   :  { %v154_v45 = vpop.permute.xlu1 %153 }
 0x119   :  { %v159_v46 = vmul.f32 %v930_v39, %v154_v45 }
 0x11b   :  { %163 = vrot.lane.b32.xlu0 %v159_v46, %s1014_s16 }
 0x11c   :  { %v156_v47 = vpop.permute.xlu1 %155 }
 0x11d   :  { %v160_v48 = vmul.f32 %v932_v42, %v156_v47 }
 0x11f   :  { %165 = vrot.lane.b32.xlu1 %v160_v48, %s1014_s16 }
 0x18d   :  { %v164_v50 = vpop.permute.xlu0 %163 }
 0x18e   :  { %v1090_v51 = vadd.f32 %v164_v50, %v149_v49 }
 0x190   :  { %933 = vtanh.f32 %v1090_v51 }
 0x191   :  { %v166_v54 = vpop.permute.xlu1 %165 }
 0x192   :  { %v1095_v55 = vadd.f32 %v166_v54, %v150_v53 }
 0x194   :  { %935 = vtanh.f32 %v1095_v55 }
 0x19a   :  { %v934_v56 = vpop.eup %933 }
 0x19b   :  { %175 = vrot.lane.b32.xlu0 %v934_v56, %s1014_s16 }
 0x19e   :  { %v936_v57 = vpop.eup %935 }
 0x19f   :  { %177 = vrot.lane.b32.xlu1 %v936_v57, %s1014_s16 }
 0x20d   :  { %v176_v58 = vpop.permute.xlu0 %175 }
 0x20e   :  { %v181_v59 = vmul.f32 %v930_v39, %v176_v58 }
 0x210   :  { %185 = vperm.xlu0 %870, %v181_v59  }
 0x211   :  { %v178_v60 = vpop.permute.xlu1 %177 }
 0x212   :  { %v182_v61 = vmul.f32 %v932_v42, %v178_v60 }
 0x214   :  { %190 = vperm.xlu1 %871, %v182_v61   ;;  %873 = vset.pattern.permute.xlu0 %v1016_v62 }
 0x215   :  { %200 = vperm.xlu0 %873, %v182_v61  }
 0x218   :  { %872 = vset.pattern.permute.xlu1 %v1016_v62 }
 0x219   :  { %196 = vperm.xlu1 %872, %v181_v59   ;;  %875 = vset.pattern.permute.xlu0 %v1017_v63 }
 0x21a   :  { %216 = vperm.xlu0 %875, %v181_v59  }
 0x21d   :  { %874 = vset.pattern.permute.xlu1 %v1018_v0 }
 0x21e   :  { %206 = vperm.xlu1 %874, %v181_v59   ;;  %878 = vset.pattern.permute.xlu0 %v1019_v3 }
 0x21f   :  { %41 = vperm.xlu0 %878, %v1052_v2  }
 0x222   :  { %210 = vperm.xlu1 %874, %v182_v61  }
 0x223   :  { %879 = vset.pattern.permute.xlu0 %v1015_v52 }
 0x226   :  { %876 = vset.pattern.permute.xlu1 %v1017_v63 }
 0x227   :  { %220 = vperm.xlu1 %876, %v182_v61  }
 0x22b   :  { %877 = vset.pattern.permute.xlu1 %v1019_v3 }
 0x22c   :  { %37 = vperm.xlu1 %877, %v1046_v1  }
 0x230   :  { %880 = vset.pattern.permute.xlu1 %v1015_v52 }
 0x28f   :  { %v186_v5 = vpop.permute.xlu0 %185 }
 0x290   :  { %v193_v31 = vmul.f32 %v186_v5, %v1064_v10 }
 0x293   :  { %v191_v6 = vpop.permute.xlu1 %190 }
 0x294   :  { %v201_v7 = vpop.permute.xlu0 %200  ;;  %v194_v17 = vmul.f32 %v191_v6, %v1064_v10 }
 0x295   :  { %v204_v18 = vmul.f32 %v201_v7, %v1066_v11 }
 0x297   :  { %v226_v28 = vadd.f32 %v204_v18, %v194_v17 }
 0x298   :  { %v197_v8 = vpop.permute.xlu1 %196 }
 0x299   :  { %v217_v14 = vpop.permute.xlu0 %216  ;;  %v203_v26 = vmul.f32 %v197_v8, %v1066_v11 }
 0x29a   :  { %v223_v27 = vmul.f32 %v217_v14, %v1070_v13 }
 0x29b   :  { %v225_v35 = vadd.f32 %v203_v26, %v193_v31 }
 0x29d   :  { %v207_v9 = vpop.permute.xlu1 %206 }
 0x29e   :  { %v42_v16 = vpop.permute.xlu0 %41  ;;  %v213_v21 = vmul.f32 %v207_v9, %v1068_v12 }
 0x29f   :  { %v45_v19 = vmul.f32 %v42_v16, %v1078_v20 }
 0x2a0   :  { %v227_v32 = vadd.f32 %v223_v27, %v213_v21 }
 0x2a1   :  { %v211_v15 = vpop.permute.xlu1 %210  ;;  %v47_v30 = vadd.f32 %v45_v19, %v1080_v23 }
 0x2a2   :  { %v214_v24 = vmul.f32 %v211_v15, %v1068_v12  ;;  %v229_v38 = vadd.f32 %v227_v32, %v225_v35 }
 0x2a6   :  { %v221_v22 = vpop.permute.xlu1 %220 }
 0x2a7   :  { %v224_v25 = vmul.f32 %v221_v22, %v1070_v13 }
 0x2a9   :  { %v228_v29 = vadd.f32 %v224_v25, %v214_v24 }
 0x2ab   :  { %v230_v33 = vadd.f32 %v228_v29, %v226_v28  ;;  %v38_v34 = vpop.permute.xlu1 %37 }
 0x2ac   :  { %v44_v36 = vmul.f32 %v38_v34, %v1078_v20 }
 0x2ad   :  { %v232_v37 = vadd.f32 %v230_v33, %v47_v30 }
 0x2ae   :  { %v46_v39 = vadd.f32 %v44_v36, %v1080_v23 }
 0x2af   :  { %v830_v40 = vmul.f32 -1.442695, %v232_v37 }
 0x2b0   :  { %v231_v41 = vadd.f32 %v229_v38, %v46_v39 }
 0x2b1   :  { %937 = vpow2.f32 %v830_v40 }
 0x2b2   :  { %v829_v42 = vmul.f32 -1.442695, %v231_v41 }
 0x2b4   :  { %939 = vpow2.f32 %v829_v42 }
 0x2bb   :  { %v938_v43 = vpop.eup %937 }
 0x2bc   :  { %v240_v44 = vadd.f32 1.0, %v938_v43 }
 0x2be   :  { %v940_v45 = vpop.eup %939  ;;  %941 = vrcp.f32 %v240_v44 }
 0x2bf   :  { %v239_v46 = vadd.f32 1.0, %v940_v45 }
 0x2c1   :  { %943 = vrcp.f32 %v239_v46 }
 0x2c8   :  { %v942_v47 = vpop.eup %941 }
 0x2c9   :  { %v246_v53 = vmul.f32 2.0, %v942_v47  ;;  %v250_v5 = vmul.f32 %v942_v47, %v1095_v55  ;;  %v1020_v55 = vmov 2  }
 0x2cb   :  { %v944_v48 = vpop.eup %943  ;;  %v832_v54 = vadd.f32 -1.0, %v246_v53 }
 0x2cc   :  { %v245_v49 = vmul.f32 2.0, %v944_v48  ;;  %v249_v60 = vmul.f32 %v944_v48, %v1090_v51 }
 0x2ce   :  { %v831_v50 = vadd.f32 -1.0, %v245_v49 }
 0x2d0   :  { %253 = vrot.lane.b32.xlu1 %v831_v50, %s1013_s15 }
 0x2d4   :  { %255 = vrot.lane.b32.xlu1 %v832_v54, %s1013_s15 }
 0x342   :  { %v254_v56 = vpop.permute.xlu1 %253 }
 0x343   :  { %v259_v57 = vmul.f32 %v944_v48, %v254_v56 }
 0x345   :  { %263 = vrot.lane.b32.xlu0 %v259_v57, %s1014_s16 }
 0x346   :  { %v256_v58 = vpop.permute.xlu1 %255 }
 0x347   :  { %v260_v59 = vmul.f32 %v942_v47, %v256_v58 }
 0x349   :  { %265 = vrot.lane.b32.xlu1 %v260_v59, %s1014_s16 }
 0x3b7   :  { %v264_v61 = vpop.permute.xlu0 %263 }
 0x3b8   :  { %v1126_v3 = vadd.f32 %v264_v61, %v249_v60 }
 0x3ba   :  { %945 = vtanh.f32 %v1126_v3 }
 0x3bb   :  { %v266_v6 = vpop.permute.xlu1 %265 }
 0x3bc   :  { %v1130_v7 = vadd.f32 %v266_v6, %v250_v5 }
 0x3be   :  { %947 = vtanh.f32 %v1130_v7 }
 0x3c4   :  { %v946_v8 = vpop.eup %945 }
 0x3c5   :  { %275 = vrot.lane.b32.xlu0 %v946_v8, %s1014_s16 }
 0x3c8   :  { %v948_v9 = vpop.eup %947 }
 0x3c9   :  { %277 = vrot.lane.b32.xlu1 %v948_v9, %s1014_s16 }
 0x437   :  { %v276_v14 = vpop.permute.xlu0 %275 }
 0x438   :  { %v281_v51 = vmul.f32 %v944_v48, %v276_v14 }
 0x43a   :  { %285 = vperm.xlu0 %879, %v281_v51  }
 0x43b   :  { %v278_v15 = vpop.permute.xlu1 %277 }
 0x43c   :  { %v282_v16 = vmul.f32 %v942_v47, %v278_v15 }
 0x43e   :  { %290 = vperm.xlu1 %880, %v282_v16   ;;  %882 = vset.pattern.permute.xlu0 %v1016_v62 }
 0x43f   :  { %300 = vperm.xlu0 %882, %v282_v16  }
 0x442   :  { %881 = vset.pattern.permute.xlu1 %v1016_v62 }
 0x443   :  { %296 = vperm.xlu1 %881, %v281_v51   ;;  %884 = vset.pattern.permute.xlu0 %v1017_v63 }
 0x444   :  { %316 = vperm.xlu0 %884, %v281_v51  }
 0x447   :  { %883 = vset.pattern.permute.xlu1 %v1018_v0 }
 0x448   :  { %306 = vperm.xlu1 %883, %v281_v51   ;;  %887 = vset.pattern.permute.xlu0 %v1020_v55 }
 0x449   :  { %53 = vperm.xlu0 %887, %v1052_v2  }
 0x44c   :  { %310 = vperm.xlu1 %883, %v282_v16  }
 0x44d   :  { %888 = vset.pattern.permute.xlu0 %v1015_v52 }
 0x450   :  { %885 = vset.pattern.permute.xlu1 %v1017_v63 }
 0x451   :  { %320 = vperm.xlu1 %885, %v282_v16  }
 0x455   :  { %886 = vset.pattern.permute.xlu1 %v1020_v55 }
 0x456   :  { %49 = vperm.xlu1 %886, %v1046_v1  }
 0x45a   :  { %889 = vset.pattern.permute.xlu1 %v1015_v52 }
 0x4b9   :  { %v286_v17 = vpop.permute.xlu0 %285 }
 0x4ba   :  { %v293_v39 = vmul.f32 %v286_v17, %v1064_v10 }
 0x4bd   :  { %v291_v18 = vpop.permute.xlu1 %290 }
 0x4be   :  { %v301_v19 = vpop.permute.xlu0 %300  ;;  %v294_v27 = vmul.f32 %v291_v18, %v1064_v10 }
 0x4bf   :  { %v304_v28 = vmul.f32 %v301_v19, %v1066_v11 }
 0x4c1   :  { %v326_v36 = vadd.f32 %v304_v28, %v294_v27 }
 0x4c2   :  { %v297_v21 = vpop.permute.xlu1 %296 }
 0x4c3   :  { %v317_v24 = vpop.permute.xlu0 %316  ;;  %v303_v34 = vmul.f32 %v297_v21, %v1066_v11 }
 0x4c4   :  { %v323_v35 = vmul.f32 %v317_v24, %v1070_v13 }
 0x4c5   :  { %v325_v43 = vadd.f32 %v303_v34, %v293_v39 }
 0x4c7   :  { %v307_v22 = vpop.permute.xlu1 %306 }
 0x4c8   :  { %v54_v26 = vpop.permute.xlu0 %53  ;;  %v313_v30 = vmul.f32 %v307_v22, %v1068_v12 }
 0x4c9   :  { %v57_v29 = vmul.f32 %v54_v26, %v1078_v20 }
 0x4ca   :  { %v327_v40 = vadd.f32 %v323_v35, %v313_v30 }
 0x4cb   :  { %v311_v25 = vpop.permute.xlu1 %310  ;;  %v59_v38 = vadd.f32 %v57_v29, %v1080_v23 }
 0x4cc   :  { %v314_v32 = vmul.f32 %v311_v25, %v1068_v12  ;;  %v329_v46 = vadd.f32 %v327_v40, %v325_v43 }
 0x4d0   :  { %v321_v31 = vpop.permute.xlu1 %320 }
 0x4d1   :  { %v324_v33 = vmul.f32 %v321_v31, %v1070_v13 }
 0x4d3   :  { %v328_v37 = vadd.f32 %v324_v33, %v314_v32 }
 0x4d5   :  { %v330_v41 = vadd.f32 %v328_v37, %v326_v36  ;;  %v50_v42 = vpop.permute.xlu1 %49 }
 0x4d6   :  { %v56_v44 = vmul.f32 %v50_v42, %v1078_v20 }
 0x4d7   :  { %v332_v45 = vadd.f32 %v330_v41, %v59_v38 }
 0x4d8   :  { %v58_v47 = vadd.f32 %v56_v44, %v1080_v23 }
 0x4d9   :  { %v834_v48 = vmul.f32 -1.442695, %v332_v45 }
 0x4da   :  { %v331_v49 = vadd.f32 %v329_v46, %v58_v47 }
 0x4db   :  { %949 = vpow2.f32 %v834_v48 }
 0x4dc   :  { %v833_v50 = vmul.f32 -1.442695, %v331_v49 }
 0x4de   :  { %951 = vpow2.f32 %v833_v50 }
 0x4e5   :  { %v950_v53 = vpop.eup %949 }
 0x4e6   :  { %v340_v54 = vadd.f32 1.0, %v950_v53 }
 0x4e8   :  { %v952_v56 = vpop.eup %951  ;;  %953 = vrcp.f32 %v340_v54 }
 0x4e9   :  { %v339_v57 = vadd.f32 1.0, %v952_v56 }
 0x4eb   :  { %955 = vrcp.f32 %v339_v57 }
 0x4f2   :  { %v954_v58 = vpop.eup %953 }
 0x4f3   :  { %v346_v5 = vmul.f32 2.0, %v954_v58  ;;  %v350_v17 = vmul.f32 %v954_v58, %v1130_v7  ;;  %v1021_v7 = vmov 3  }
 0x4f5   :  { %v956_v59 = vpop.eup %955  ;;  %v836_v6 = vadd.f32 -1.0, %v346_v5 }
 0x4f6   :  { %v345_v60 = vmul.f32 2.0, %v956_v59  ;;  %v349_v15 = vmul.f32 %v956_v59, %v1126_v3 }
 0x4f8   :  { %v835_v61 = vadd.f32 -1.0, %v345_v60 }
 0x4fa   :  { %353 = vrot.lane.b32.xlu1 %v835_v61, %s1013_s15 }
 0x4fe   :  { %355 = vrot.lane.b32.xlu1 %v836_v6, %s1013_s15 }
 0x56c   :  { %v354_v8 = vpop.permute.xlu1 %353 }
 0x56d   :  { %v359_v9 = vmul.f32 %v956_v59, %v354_v8 }
 0x56f   :  { %363 = vrot.lane.b32.xlu0 %v359_v9, %s1014_s16 }
 0x570   :  { %v356_v14 = vpop.permute.xlu1 %355 }
 0x571   :  { %v360_v51 = vmul.f32 %v954_v58, %v356_v14 }
 0x573   :  { %365 = vrot.lane.b32.xlu1 %v360_v51, %s1014_s16 }
 0x5e1   :  { %v364_v16 = vpop.permute.xlu0 %363 }
 0x5e2   :  { %v1161_v55 = vadd.f32 %v364_v16, %v349_v15 }
 0x5e4   :  { %957 = vtanh.f32 %v1161_v55 }
 0x5e5   :  { %v366_v18 = vpop.permute.xlu1 %365 }
 0x5e6   :  { %v1165_v19 = vadd.f32 %v366_v18, %v350_v17 }
 0x5e8   :  { %959 = vtanh.f32 %v1165_v19 }
 0x5ee   :  { %v958_v21 = vpop.eup %957 }
 0x5ef   :  { %375 = vrot.lane.b32.xlu0 %v958_v21, %s1014_s16 }
 0x5f2   :  { %v960_v22 = vpop.eup %959 }
 0x5f3   :  { %377 = vrot.lane.b32.xlu1 %v960_v22, %s1014_s16 }
 0x661   :  { %v376_v24 = vpop.permute.xlu0 %375 }
 0x662   :  { %v381_v3 = vmul.f32 %v956_v59, %v376_v24 }
 0x664   :  { %385 = vperm.xlu0 %888, %v381_v3  }
 0x665   :  { %v378_v25 = vpop.permute.xlu1 %377 }
 0x666   :  { %v382_v26 = vmul.f32 %v954_v58, %v378_v25 }
 0x668   :  { %390 = vperm.xlu1 %889, %v382_v26   ;;  %891 = vset.pattern.permute.xlu0 %v1016_v62 }
 0x669   :  { %400 = vperm.xlu0 %891, %v382_v26  }
 0x66c   :  { %890 = vset.pattern.permute.xlu1 %v1016_v62 }
 0x66d   :  { %396 = vperm.xlu1 %890, %v381_v3   ;;  %893 = vset.pattern.permute.xlu0 %v1017_v63 }
 0x66e   :  { %416 = vperm.xlu0 %893, %v381_v3  }
 0x671   :  { %892 = vset.pattern.permute.xlu1 %v1018_v0 }
 0x672   :  { %406 = vperm.xlu1 %892, %v381_v3   ;;  %896 = vset.pattern.permute.xlu0 %v1021_v7 }
 0x673   :  { %65 = vperm.xlu0 %896, %v1052_v2  }
 0x676   :  { %410 = vperm.xlu1 %892, %v382_v26  }
 0x677   :  { %897 = vset.pattern.permute.xlu0 %v1015_v52 }
 0x67a   :  { %894 = vset.pattern.permute.xlu1 %v1017_v63 }
 0x67b   :  { %420 = vperm.xlu1 %894, %v382_v26  }
 0x67f   :  { %895 = vset.pattern.permute.xlu1 %v1021_v7 }
 0x680   :  { %61 = vperm.xlu1 %895, %v1046_v1  }
 0x684   :  { %898 = vset.pattern.permute.xlu1 %v1015_v52 }
 0x6e3   :  { %v386_v27 = vpop.permute.xlu0 %385 }
 0x6e4   :  { %v393_v47 = vmul.f32 %v386_v27, %v1064_v10 }
 0x6e7   :  { %v391_v28 = vpop.permute.xlu1 %390 }
 0x6e8   :  { %v401_v29 = vpop.permute.xlu0 %400  ;;  %v394_v35 = vmul.f32 %v391_v28, %v1064_v10 }
 0x6e9   :  { %v404_v36 = vmul.f32 %v401_v29, %v1066_v11 }
 0x6eb   :  { %v426_v44 = vadd.f32 %v404_v36, %v394_v35 }
 0x6ec   :  { %v397_v30 = vpop.permute.xlu1 %396 }
 0x6ed   :  { %v417_v32 = vpop.permute.xlu0 %416  ;;  %v403_v42 = vmul.f32 %v397_v30, %v1066_v11 }
 0x6ee   :  { %v423_v43 = vmul.f32 %v417_v32, %v1070_v13 }
 0x6ef   :  { %v425_v53 = vadd.f32 %v403_v42, %v393_v47 }
 0x6f1   :  { %v407_v31 = vpop.permute.xlu1 %406 }
 0x6f2   :  { %v66_v34 = vpop.permute.xlu0 %65  ;;  %v413_v38 = vmul.f32 %v407_v31, %v1068_v12 }
 0x6f3   :  { %v69_v37 = vmul.f32 %v66_v34, %v1078_v20 }
 0x6f4   :  { %v427_v48 = vadd.f32 %v423_v43, %v413_v38 }
 0x6f5   :  { %v411_v33 = vpop.permute.xlu1 %410  ;;  %v71_v46 = vadd.f32 %v69_v37, %v1080_v23 }
 0x6f6   :  { %v414_v40 = vmul.f32 %v411_v33, %v1068_v12  ;;  %v429_v57 = vadd.f32 %v427_v48, %v425_v53 }
 0x6fa   :  { %v421_v39 = vpop.permute.xlu1 %420 }
 0x6fb   :  { %v424_v41 = vmul.f32 %v421_v39, %v1070_v13 }
 0x6fd   :  { %v428_v45 = vadd.f32 %v424_v41, %v414_v40 }
 0x6ff   :  { %v430_v49 = vadd.f32 %v428_v45, %v426_v44  ;;  %v62_v50 = vpop.permute.xlu1 %61 }
 0x700   :  { %v68_v54 = vmul.f32 %v62_v50, %v1078_v20 }
 0x701   :  { %v432_v56 = vadd.f32 %v430_v49, %v71_v46 }
 0x702   :  { %v70_v58 = vadd.f32 %v68_v54, %v1080_v23 }
 0x703   :  { %v838_v59 = vmul.f32 -1.442695, %v432_v56 }
 0x704   :  { %v431_v60 = vadd.f32 %v429_v57, %v70_v58 }
 0x705   :  { %961 = vpow2.f32 %v838_v59 }
 0x706   :  { %v837_v61 = vmul.f32 -1.442695, %v431_v60 }
 0x708   :  { %963 = vpow2.f32 %v837_v61 }
 0x70f   :  { %v962_v5 = vpop.eup %961 }
 0x710   :  { %v440_v6 = vadd.f32 1.0, %v962_v5 }
 0x712   :  { %v964_v8 = vpop.eup %963  ;;  %965 = vrcp.f32 %v440_v6 }
 0x713   :  { %v439_v9 = vadd.f32 1.0, %v964_v8 }
 0x715   :  { %967 = vrcp.f32 %v439_v9 }
 0x71c   :  { %v966_v14 = vpop.eup %965 }
 0x71d   :  { %v446_v17 = vmul.f32 2.0, %v966_v14  ;;  %v450_v27 = vmul.f32 %v966_v14, %v1165_v19  ;;  %v1022_v19 = vmov 4  }
 0x71f   :  { %v968_v51 = vpop.eup %967  ;;  %v840_v18 = vadd.f32 -1.0, %v446_v17 }
 0x720   :  { %v445_v15 = vmul.f32 2.0, %v968_v51  ;;  %v449_v25 = vmul.f32 %v968_v51, %v1161_v55 }
 0x722   :  { %v839_v16 = vadd.f32 -1.0, %v445_v15 }
 0x724   :  { %453 = vrot.lane.b32.xlu1 %v839_v16, %s1013_s15 }
 0x728   :  { %455 = vrot.lane.b32.xlu1 %v840_v18, %s1013_s15 }
 0x796   :  { %v454_v21 = vpop.permute.xlu1 %453 }
 0x797   :  { %v459_v22 = vmul.f32 %v968_v51, %v454_v21 }
 0x799   :  { %463 = vrot.lane.b32.xlu0 %v459_v22, %s1014_s16 }
 0x79a   :  { %v456_v24 = vpop.permute.xlu1 %455 }
 0x79b   :  { %v460_v3 = vmul.f32 %v966_v14, %v456_v24 }
 0x79d   :  { %465 = vrot.lane.b32.xlu1 %v460_v3, %s1014_s16 }
 0x80b   :  { %v464_v26 = vpop.permute.xlu0 %463 }
 0x80c   :  { %v1196_v7 = vadd.f32 %v464_v26, %v449_v25 }
 0x80e   :  { %969 = vtanh.f32 %v1196_v7 }
 0x80f   :  { %v466_v28 = vpop.permute.xlu1 %465 }
 0x810   :  { %v1200_v29 = vadd.f32 %v466_v28, %v450_v27 }
 0x812   :  { %971 = vtanh.f32 %v1200_v29 }
 0x818   :  { %v970_v30 = vpop.eup %969 }
 0x819   :  { %475 = vrot.lane.b32.xlu0 %v970_v30, %s1014_s16 }
 0x81c   :  { %v972_v31 = vpop.eup %971 }
 0x81d   :  { %477 = vrot.lane.b32.xlu1 %v972_v31, %s1014_s16 }
 0x88b   :  { %v476_v32 = vpop.permute.xlu0 %475 }
 0x88c   :  { %v481_v55 = vmul.f32 %v968_v51, %v476_v32 }
 0x88e   :  { %485 = vperm.xlu0 %897, %v481_v55  }
 0x88f   :  { %v478_v33 = vpop.permute.xlu1 %477 }
 0x890   :  { %v482_v34 = vmul.f32 %v966_v14, %v478_v33 }
 0x892   :  { %490 = vperm.xlu1 %898, %v482_v34   ;;  %900 = vset.pattern.permute.xlu0 %v1016_v62 }
 0x893   :  { %500 = vperm.xlu0 %900, %v482_v34  }
 0x896   :  { %899 = vset.pattern.permute.xlu1 %v1016_v62 }
 0x897   :  { %496 = vperm.xlu1 %899, %v481_v55   ;;  %902 = vset.pattern.permute.xlu0 %v1017_v63 }
 0x898   :  { %516 = vperm.xlu0 %902, %v481_v55  }
 0x89b   :  { %901 = vset.pattern.permute.xlu1 %v1018_v0 }
 0x89c   :  { %506 = vperm.xlu1 %901, %v481_v55   ;;  %905 = vset.pattern.permute.xlu0 %v1022_v19 }
 0x89d   :  { %77 = vperm.xlu0 %905, %v1052_v2  }
 0x8a0   :  { %510 = vperm.xlu1 %901, %v482_v34  }
 0x8a1   :  { %906 = vset.pattern.permute.xlu0 %v1015_v52 }
 0x8a4   :  { %903 = vset.pattern.permute.xlu1 %v1017_v63 }
 0x8a5   :  { %520 = vperm.xlu1 %903, %v482_v34  }
 0x8a9   :  { %904 = vset.pattern.permute.xlu1 %v1022_v19 }
 0x8aa   :  { %73 = vperm.xlu1 %904, %v1046_v1  }
 0x8ae   :  { %907 = vset.pattern.permute.xlu1 %v1015_v52 }
 0x90d   :  { %v486_v35 = vpop.permute.xlu0 %485 }
 0x90e   :  { %v493_v58 = vmul.f32 %v486_v35, %v1064_v10 }
 0x911   :  { %v491_v36 = vpop.permute.xlu1 %490 }
 0x912   :  { %v501_v37 = vpop.permute.xlu0 %500  ;;  %v494_v43 = vmul.f32 %v491_v36, %v1064_v10 }
 0x913   :  { %v504_v44 = vmul.f32 %v501_v37, %v1066_v11 }
 0x915   :  { %v526_v54 = vadd.f32 %v504_v44, %v494_v43 }
 0x916   :  { %v497_v38 = vpop.permute.xlu1 %496 }
 0x917   :  { %v517_v40 = vpop.permute.xlu0 %516  ;;  %v503_v50 = vmul.f32 %v497_v38, %v1066_v11 }
 0x918   :  { %v523_v53 = vmul.f32 %v517_v40, %v1070_v13 }
 0x919   :  { %v525_v5 = vadd.f32 %v503_v50, %v493_v58 }
 0x91b   :  { %v507_v39 = vpop.permute.xlu1 %506 }
 0x91c   :  { %v78_v42 = vpop.permute.xlu0 %77  ;;  %v513_v46 = vmul.f32 %v507_v39, %v1068_v12 }
 0x91d   :  { %v81_v45 = vmul.f32 %v78_v42, %v1078_v20 }
 0x91e   :  { %v527_v59 = vadd.f32 %v523_v53, %v513_v46 }
 0x91f   :  { %v511_v41 = vpop.permute.xlu1 %510  ;;  %v83_v57 = vadd.f32 %v81_v45, %v1080_v23 }
 0x920   :  { %v514_v48 = vmul.f32 %v511_v41, %v1068_v12  ;;  %v529_v9 = vadd.f32 %v527_v59, %v525_v5 }
 0x924   :  { %v521_v47 = vpop.permute.xlu1 %520 }
 0x925   :  { %v524_v49 = vmul.f32 %v521_v47, %v1070_v13 }
 0x927   :  { %v528_v56 = vadd.f32 %v524_v49, %v514_v48 }
 0x929   :  { %v530_v60 = vadd.f32 %v528_v56, %v526_v54  ;;  %v74_v61 = vpop.permute.xlu1 %73 }
 0x92a   :  { %v80_v6 = vmul.f32 %v74_v61, %v1078_v20 }
 0x92b   :  { %v532_v8 = vadd.f32 %v530_v60, %v83_v57 }
 0x92c   :  { %v82_v14 = vadd.f32 %v80_v6, %v1080_v23 }
 0x92d   :  { %v842_v51 = vmul.f32 -1.442695, %v532_v8 }
 0x92e   :  { %v531_v15 = vadd.f32 %v529_v9, %v82_v14 }
 0x92f   :  { %973 = vpow2.f32 %v842_v51 }
 0x930   :  { %v841_v16 = vmul.f32 -1.442695, %v531_v15 }
 0x932   :  { %975 = vpow2.f32 %v841_v16 }
 0x939   :  { %v974_v17 = vpop.eup %973 }
 0x93a   :  { %v540_v18 = vadd.f32 1.0, %v974_v17 }
 0x93c   :  { %v976_v21 = vpop.eup %975  ;;  %977 = vrcp.f32 %v540_v18 }
 0x93d   :  { %v539_v22 = vadd.f32 1.0, %v976_v21 }
 0x93f   :  { %979 = vrcp.f32 %v539_v22 }
 0x946   :  { %v978_v24 = vpop.eup %977 }
 0x947   :  { %v546_v27 = vmul.f32 2.0, %v978_v24  ;;  %v550_v35 = vmul.f32 %v978_v24, %v1200_v29  ;;  %v1023_v29 = vmov 5  }
 0x949   :  { %v980_v3 = vpop.eup %979  ;;  %v844_v28 = vadd.f32 -1.0, %v546_v27 }
 0x94a   :  { %v545_v25 = vmul.f32 2.0, %v980_v3  ;;  %v549_v33 = vmul.f32 %v980_v3, %v1196_v7 }
 0x94c   :  { %v843_v26 = vadd.f32 -1.0, %v545_v25 }
 0x94e   :  { %553 = vrot.lane.b32.xlu1 %v843_v26, %s1013_s15 }
 0x952   :  { %555 = vrot.lane.b32.xlu1 %v844_v28, %s1013_s15 }
 0x9c0   :  { %v554_v30 = vpop.permute.xlu1 %553 }
 0x9c1   :  { %v559_v31 = vmul.f32 %v980_v3, %v554_v30 }
 0x9c3   :  { %563 = vrot.lane.b32.xlu0 %v559_v31, %s1014_s16 }
 0x9c4   :  { %v556_v32 = vpop.permute.xlu1 %555 }
 0x9c5   :  { %v560_v55 = vmul.f32 %v978_v24, %v556_v32 }
 0x9c7   :  { %565 = vrot.lane.b32.xlu1 %v560_v55, %s1014_s16 }
 0xa35   :  { %v564_v34 = vpop.permute.xlu0 %563 }
 0xa36   :  { %v1231_v19 = vadd.f32 %v564_v34, %v549_v33 }
 0xa38   :  { %981 = vtanh.f32 %v1231_v19 }
 0xa39   :  { %v566_v36 = vpop.permute.xlu1 %565 }
 0xa3a   :  { %v1235_v37 = vadd.f32 %v566_v36, %v550_v35 }
 0xa3c   :  { %983 = vtanh.f32 %v1235_v37 }
 0xa42   :  { %v982_v38 = vpop.eup %981 }
 0xa43   :  { %575 = vrot.lane.b32.xlu0 %v982_v38, %s1014_s16 }
 0xa46   :  { %v984_v39 = vpop.eup %983 }
 0xa47   :  { %577 = vrot.lane.b32.xlu1 %v984_v39, %s1014_s16 }
 0xab5   :  { %v576_v40 = vpop.permute.xlu0 %575 }
 0xab6   :  { %v581_v7 = vmul.f32 %v980_v3, %v576_v40 }
 0xab8   :  { %585 = vperm.xlu0 %906, %v581_v7  }
 0xab9   :  { %v578_v41 = vpop.permute.xlu1 %577 }
 0xaba   :  { %v582_v42 = vmul.f32 %v978_v24, %v578_v41 }
 0xabc   :  { %590 = vperm.xlu1 %907, %v582_v42   ;;  %909 = vset.pattern.permute.xlu0 %v1016_v62 }
 0xabd   :  { %600 = vperm.xlu0 %909, %v582_v42  }
 0xac0   :  { %908 = vset.pattern.permute.xlu1 %v1016_v62 }
 0xac1   :  { %596 = vperm.xlu1 %908, %v581_v7   ;;  %911 = vset.pattern.permute.xlu0 %v1017_v63 }
 0xac2   :  { %616 = vperm.xlu0 %911, %v581_v7  }
 0xac5   :  { %910 = vset.pattern.permute.xlu1 %v1018_v0 }
 0xac6   :  { %606 = vperm.xlu1 %910, %v581_v7   ;;  %914 = vset.pattern.permute.xlu0 %v1023_v29 }
 0xac7   :  { %89 = vperm.xlu0 %914, %v1052_v2  }
 0xaca   :  { %610 = vperm.xlu1 %910, %v582_v42  }
 0xacb   :  { %915 = vset.pattern.permute.xlu0 %v1015_v52 }
 0xace   :  { %912 = vset.pattern.permute.xlu1 %v1017_v63 }
 0xacf   :  { %620 = vperm.xlu1 %912, %v582_v42  }
 0xad3   :  { %913 = vset.pattern.permute.xlu1 %v1023_v29 }
 0xad4   :  { %85 = vperm.xlu1 %913, %v1046_v1  }
 0xad8   :  { %916 = vset.pattern.permute.xlu1 %v1015_v52 }
 0xb37   :  { %v586_v43 = vpop.permute.xlu0 %585 }
 0xb38   :  { %v593_v6 = vmul.f32 %v586_v43, %v1064_v10 }
 0xb3b   :  { %v591_v44 = vpop.permute.xlu1 %590 }
 0xb3c   :  { %v601_v45 = vpop.permute.xlu0 %600  ;;  %v594_v2 = vmul.f32 %v591_v44, %v1064_v10 }
 0xb3d   :  { %v604_v53 = vmul.f32 %v601_v45, %v1066_v11 }
 0xb3f   :  { %v626_v60 = vadd.f32 %v604_v53, %v594_v2 }
 0xb40   :  { %v597_v46 = vpop.permute.xlu1 %596 }
 0xb41   :  { %v617_v48 = vpop.permute.xlu0 %616  ;;  %v603_v58 = vmul.f32 %v597_v46, %v1066_v11 }
 0xb42   :  { %v623_v59 = vmul.f32 %v617_v48, %v1070_v13  ;;  %v1009_v48 = vld [vmem:[%s1317_s0 + $0x8] sm:$0xff] }
 0xb43   :  { %v625_v51 = vadd.f32 %v603_v58, %v593_v6 }
 0xb45   :  { %v607_v47 = vpop.permute.xlu1 %606 }
 0xb46   :  { %v90_v50 = vpop.permute.xlu0 %89  ;;  %v613_v56 = vmul.f32 %v607_v47, %v1068_v12 }
 0xb47   :  { %v93_v54 = vmul.f32 %v90_v50, %v1078_v20 }
 0xb48   :  { %v627_v8 = vadd.f32 %v623_v59, %v613_v56 }
 0xb49   :  { %v611_v49 = vpop.permute.xlu1 %610  ;;  %v95_v5 = vadd.f32 %v93_v54, %v1080_v23 }
 0xb4a   :  { %v614_v1 = vmul.f32 %v611_v49, %v1068_v12  ;;  %v629_v17 = vadd.f32 %v627_v8, %v625_v51 }
 0xb4e   :  { %v621_v57 = vpop.permute.xlu1 %620 }
 0xb4f   :  { %v624_v52 = vmul.f32 %v621_v57, %v1070_v13 }
 0xb51   :  { %v628_v61 = vadd.f32 %v624_v52, %v614_v1 }
 0xb53   :  { %v630_v9 = vadd.f32 %v628_v61, %v626_v60  ;;  %v86_v14 = vpop.permute.xlu1 %85 }
 0xb54   :  { %v92_v15 = vmul.f32 %v86_v14, %v1078_v20 }
 0xb55   :  { %v632_v16 = vadd.f32 %v630_v9, %v95_v5 }
 0xb56   :  { %v94_v18 = vadd.f32 %v92_v15, %v1080_v23 }
 0xb57   :  { %v846_v21 = vmul.f32 -1.442695, %v632_v16 }
 0xb58   :  { %v631_v22 = vadd.f32 %v629_v17, %v94_v18 }
 0xb59   :  { %985 = vpow2.f32 %v846_v21 }
 0xb5a   :  { %v845_v24 = vmul.f32 -1.442695, %v631_v22 }
 0xb5c   :  { %987 = vpow2.f32 %v845_v24 }
 0xb63   :  { %v986_v3 = vpop.eup %985 }
 0xb64   :  { %v640_v25 = vadd.f32 1.0, %v986_v3 }
 0xb66   :  { %v988_v26 = vpop.eup %987  ;;  %989 = vrcp.f32 %v640_v25 }
 0xb67   :  { %v639_v27 = vadd.f32 1.0, %v988_v26 }
 0xb69   :  { %991 = vrcp.f32 %v639_v27 }
 0xb70   :  { %v990_v28 = vpop.eup %989 }
 0xb71   :  { %v646_v55 = vmul.f32 2.0, %v990_v28  ;;  %v650_v41 = vmul.f32 %v990_v28, %v1235_v37  ;;  %v1024_v37 = vmov 6  }
 0xb73   :  { %v992_v30 = vpop.eup %991  ;;  %v848_v33 = vadd.f32 -1.0, %v646_v55 }
 0xb74   :  { %v645_v31 = vmul.f32 2.0, %v992_v30  ;;  %v649_v39 = vmul.f32 %v992_v30, %v1231_v19 }
 0xb76   :  { %v847_v32 = vadd.f32 -1.0, %v645_v31 }
 0xb78   :  { %653 = vrot.lane.b32.xlu1 %v847_v32, %s1013_s15 }
 0xb7c   :  { %655 = vrot.lane.b32.xlu1 %v848_v33, %s1013_s15 }
 0xbea   :  { %v654_v34 = vpop.permute.xlu1 %653 }
 0xbeb   :  { %v659_v35 = vmul.f32 %v992_v30, %v654_v34 }
 0xbed   :  { %663 = vrot.lane.b32.xlu0 %v659_v35, %s1014_s16 }
 0xbee   :  { %v656_v36 = vpop.permute.xlu1 %655 }
 0xbef   :  { %v660_v38 = vmul.f32 %v990_v28, %v656_v36 }
 0xbf1   :  { %665 = vrot.lane.b32.xlu1 %v660_v38, %s1014_s16 }
 0xc5f   :  { %v664_v40 = vpop.permute.xlu0 %663 }
 0xc60   :  { %v1266_v7 = vadd.f32 %v664_v40, %v649_v39 }
 0xc62   :  { %993 = vtanh.f32 %v1266_v7 }
 0xc63   :  { %v666_v42 = vpop.permute.xlu1 %665 }
 0xc64   :  { %v1270_v29 = vadd.f32 %v666_v42, %v650_v41 }
 0xc66   :  { %995 = vtanh.f32 %v1270_v29 }
 0xc6c   :  { %v994_v43 = vpop.eup %993 }
 0xc6d   :  { %675 = vrot.lane.b32.xlu0 %v994_v43, %s1014_s16  ;;  %v785_v43 = vsub.s32 6, %v1055_v4 }
 0xc70   :  { %v996_v44 = vpop.eup %995 }
 0xc71   :  { %677 = vrot.lane.b32.xlu1 %v996_v44, %s1014_s16 }
 0xcdf   :  { %v676_v45 = vpop.permute.xlu0 %675 }
 0xce0   :  { %v681_v19 = vmul.f32 %v992_v30, %v676_v45  ;;  %v1011_v45 = vld [vmem:[%s1318_s1] sm:$0xff]  ;;  %s1027_s1 = smov 124  }
 0xce2   :  { %685 = vperm.xlu0 %915, %v681_v19  }
 0xce3   :  { %v678_v46 = vpop.permute.xlu1 %677 }
 0xce4   :  { %v682_v47 = vmul.f32 %v990_v28, %v678_v46 }
 0xce6   :  { %690 = vperm.xlu1 %916, %v682_v47   ;;  %918 = vset.pattern.permute.xlu0 %v1016_v62 }
 0xce7   :  { %700 = vperm.xlu0 %918, %v682_v47  }
 0xcea   :  { %917 = vset.pattern.permute.xlu1 %v1016_v62  ;;  %v1010_v62 = vld [vmem:[%s1317_s0] sm:$0xff] }
 0xceb   :  { %696 = vperm.xlu1 %917, %v681_v19   ;;  %920 = vset.pattern.permute.xlu0 %v1017_v63 }
 0xcec   :  { %716 = vperm.xlu0 %920, %v681_v19  }
 0xcef   :  { %919 = vset.pattern.permute.xlu1 %v1018_v0 }
 0xcf0   :  { %706 = vperm.xlu1 %919, %v681_v19   ;;  %923 = vset.pattern.permute.xlu0 %v1024_v37  ;;  %v786_v19 = vrot.slane %v1011_v45, %v785_v43 }
 0xcf1   :  { %101 = vperm.xlu0 %923, %v1009_v48  }
 0xcf4   :  { %710 = vperm.xlu1 %919, %v682_v47  }
 0xcf5   :  { %924 = vset.pattern.permute.xlu0 %v1017_v63 }
 0xcf8   :  { %921 = vset.pattern.permute.xlu1 %v1017_v63 }
 0xcf9   :  { %720 = vperm.xlu1 %921, %v682_v47  }
 0xcfd   :  { %922 = vset.pattern.permute.xlu1 %v1024_v37 }
 0xcfe   :  { %97 = vperm.xlu1 %922, %v1010_v62  }
 0xd61   :  { %v686_v0 = vpop.permute.xlu0 %685 }
 0xd62   :  { %v693_v51 = vmul.f32 %v686_v0, %v1064_v10 }
 0xd65   :  { %v691_v49 = vpop.permute.xlu1 %690 }
 0xd66   :  { %v701_v50 = vpop.permute.xlu0 %700  ;;  %v694_v1 = vmul.f32 %v691_v49, %v1064_v10 }
 0xd67   :  { %v704_v52 = vmul.f32 %v701_v50, %v1066_v11 }
 0xd69   :  { %v726_v8 = vadd.f32 %v704_v52, %v694_v1 }
 0xd6a   :  { %v697_v2 = vpop.permute.xlu1 %696 }
 0xd6b   :  { %v717_v54 = vpop.permute.xlu0 %716  ;;  %v703_v5 = vmul.f32 %v697_v2, %v1066_v11 }
 0xd6c   :  { %v723_v6 = vmul.f32 %v717_v54, %v1070_v13 }
 0xd6d   :  { %v725_v18 = vadd.f32 %v703_v5, %v693_v51 }
 0xd6f   :  { %v707_v53 = vpop.permute.xlu1 %706 }
 0xd70   :  { %v102_v57 = vpop.permute.xlu0 %101  ;;  %v713_v58 = vmul.f32 %v707_v53, %v1068_v12 }
 0xd71   :  { %v105_v63 = vmul.f32 %v102_v57, %v1078_v20 }
 0xd72   :  { %v727_v15 = vadd.f32 %v723_v6, %v713_v58 }
 0xd73   :  { %v711_v56 = vpop.permute.xlu1 %710  ;;  %v107_v14 = vadd.f32 %v105_v63, %v1080_v23 }
 0xd74   :  { %v714_v60 = vmul.f32 %v711_v56, %v1068_v12  ;;  %v729_v12 = vadd.f32 %v727_v15, %v725_v18 }
 0xd78   :  { %v721_v59 = vpop.permute.xlu1 %720 }
 0xd79   :  { %v724_v61 = vmul.f32 %v721_v59, %v1070_v13 }
 0xd7b   :  { %v728_v9 = vadd.f32 %v724_v61, %v714_v60 }
 0xd7d   :  { %v730_v16 = vadd.f32 %v728_v9, %v726_v8  ;;  %v98_v17 = vpop.permute.xlu1 %97 }
 0xd7e   :  { %v104_v21 = vmul.f32 %v98_v17, %v1078_v20 }
 0xd7f   :  { %v732_v22 = vadd.f32 %v730_v16, %v107_v14 }
 0xd80   :  { %v106_v24 = vadd.f32 %v104_v21, %v1080_v23 }
 0xd81   :  { %v850_v3 = vmul.f32 -1.442695, %v732_v22 }
 0xd82   :  { %v731_v11 = vadd.f32 %v729_v12, %v106_v24 }
 0xd83   :  { %997 = vpow2.f32 %v850_v3 }
 0xd84   :  { %v849_v13 = vmul.f32 -1.442695, %v731_v11 }
 0xd86   :  { %999 = vpow2.f32 %v849_v13 }
 0xd8d   :  { %v998_v25 = vpop.eup %997 }
 0xd8e   :  { %v740_v26 = vadd.f32 1.0, %v998_v25 }
 0xd90   :  { %v1000_v27 = vpop.eup %999  ;;  %1001 = vrcp.f32 %v740_v26 }
 0xd91   :  { %v739_v28 = vadd.f32 1.0, %v1000_v27 }
 0xd93   :  { %1003 = vrcp.f32 %v739_v28 }
 0xd9a   :  { %v1002_v10 = vpop.eup %1001 }
 0xd9b   :  { %v746_v20 = vmul.f32 2.0, %v1002_v10  ;;  %v750_v40 = vmul.f32 %v1002_v10, %v1270_v29 }
 0xd9d   :  { %v1004_v30 = vpop.eup %1003  ;;  %v852_v55 = vadd.f32 -1.0, %v746_v20 }
 0xd9e   :  { %v745_v31 = vmul.f32 2.0, %v1004_v30  ;;  %v749_v36 = vmul.f32 %v1004_v30, %v1266_v7 }
 0xda0   :  { %v851_v32 = vadd.f32 -1.0, %v745_v31 }
 0xda2   :  { %753 = vrot.lane.b32.xlu1 %v851_v32, %s1013_s15 }
 0xda6   :  { %755 = vrot.lane.b32.xlu1 %v852_v55, %s1013_s15 }
 0xe14   :  { %v754_v23 = vpop.permute.xlu1 %753 }
 0xe15   :  { %v759_v33 = vmul.f32 %v1004_v30, %v754_v23 }
 0xe17   :  { %763 = vrot.lane.b32.xlu0 %v759_v33, %s1014_s16 }
 0xe18   :  { %v756_v34 = vpop.permute.xlu1 %755 }
 0xe19   :  { %v760_v35 = vmul.f32 %v1002_v10, %v756_v34 }
 0xe1b   :  { %765 = vrot.lane.b32.xlu1 %v760_v35, %s1014_s16 }
 0xe89   :  { %v764_v38 = vpop.permute.xlu0 %763 }
 0xe8a   :  { %v769_v39 = vadd.f32 %v764_v38, %v749_v36 }
 0xe8c   :  { %1005 = vtanh.f32 %v769_v39 }
 0xe8d   :  { %v766_v41 = vpop.permute.xlu1 %765 }
 0xe8e   :  { %v770_v42 = vadd.f32 %v766_v41, %v750_v40 }
 0xe90   :  { %1007 = vtanh.f32 %v770_v42 }
 0xe96   :  { %v1006_v44 = vpop.eup %1005 }
 0xe97   :  { %775 = vrot.lane.b32.xlu0 %v1006_v44, %s1014_s16 }
 0xe9a   :  { %v1008_v46 = vpop.eup %1007 }
 0xe9b   :  { %777 = vrot.lane.b32.xlu1 %v1008_v46, %s1014_s16  ;;  %788 = vrot.lane.b32.xlu0 %v786_v19, %s1025_s22 }
 0xf09   :  { %v776_v7 = vpop.permute.xlu0 %775 }
 0xf0a   :  { %v781_v29 = vmul.f32 %v1004_v30, %v776_v7 }
 0xf0d   :  { %v778_v47 = vpop.permute.xlu1 %777  ;;  %v789_v37 = vpop.permute.xlu0 %788 }
 0xf0e   :  { %v782_v48 = vmul.f32 %v1002_v10, %v778_v47  ;;  %v791_v62 = vmul.f32 %v789_v37, %v781_v29 }
 0xf10   :  { %v792_v4 = vmul.f32 %v789_v37, %v782_v48  ;;  %795 = vrot.lane.b32.xlu1 %v791_v62, %s1026_s23 }
 0xf12   :  { %797 = vrot.lane.b32.xlu0 %v792_v4, %s1026_s23 }
 0xf82   :  { %v796_v0 = vpop.permute.xlu1 %795 }
 0xf83   :  { %v802_v49 = vsel %vm801_vm0, %v796_v0, 0.0 }
 0xf84   :  { %v798_v50 = vpop.permute.xlu0 %797  ;;  %803 = vadd.xlane.f32.xlu1 %v802_v49 }
 0xf85   :  { %v805_v2 = vsel %vm801_vm0, %v798_v50, 0.0 }
 0xf86   :  { %806 = vadd.xlane.f32.xlu0 %v805_v2 }
0x1011   :  { %v804_v53 = vpop.xlane.xlu1 %803 }
0x1012   :  { %v808_v54 = vadd.f32 %v804_v53, %v786_v19 }
0x1013   :  { %v807_v56 = vpop.xlane.xlu0 %806 }
0x1014   :  { %v809_v57 = vadd.f32 %v807_v56, %v786_v19  ;;  %812 = vrot.lane.b32.xlu0 %v808_v54, %s1027_s1 }
0x1016   :  { %814 = vrot.lane.b32.xlu1 %v809_v57, %s1027_s1 }
0x1086   :  { %v813_v1 = vpop.permute.xlu0 %812 }
0x1087   :  { %819 = vst.msk [vmem:[%s1319_s2] sm:$0xff] %vm818_vm1, %v813_v1 }
0x1088   :  { %v815_v52 = vpop.permute.xlu1 %814 }
0x1089   :  { %820 = vst.msk [vmem:[%s1319_s2 + $0x8] sm:$0xff] %vm818_vm1, %v815_v52 }

</bundles_post_ra>
